<compile_context>
chip_gen: v7x
topology: tpu7x:2x2x1
jax: 0.10.0
libtpu: 0.0.40
codegen_flags: <defaults>
</compile_context>

<pallas_src>
import numpy as np
import jax
import jax.numpy as jnp
from jax.experimental import pallas as pl
from jax.experimental.pallas import tpu as pltpu


def graphnorm_kernel(cnt_ref, x_ref, w_ref, b_ref, ms_ref, o_ref):
    # cnt_ref: [B] int32 in SMEM (scalar prefetch) -> nodes per graph
    # x_ref:   [1, P, H] padded node features for this graph
    # w/b/ms:  [1, H] weight / bias / mean_scale
    # o_ref:   [1, P, H] normalized output (padding rows are garbage, dropped
    #          by the wrapper)
    g = pl.program_id(0)
    cnt = cnt_ref[g]                                     # int32 scalar
    inv_cnt = 1.0 / jnp.maximum(cnt.astype(jnp.float32), 1.0)

    x = x_ref[0, :, :]                                   # [P, H]
    P = x.shape[0]

    # row-validity mask for the padded rows
    row = jax.lax.broadcasted_iota(jnp.int32, (P, 1), 0)  # [P, 1]
    mask = (row < cnt).astype(jnp.float32)                # [P, 1]

    # per-graph mean over nodes (per feature)  -> XLU cross-sublane reduce
    mean = jnp.sum(x * mask, axis=0, keepdims=True) * inv_cnt      # [1, H]

    # center with learnable mean scale
    sub = x - mean * ms_ref[...]                                   # [P, H]

    # per-graph variance of centered values (masked)
    var = jnp.sum(sub * sub * mask, axis=0, keepdims=True) * inv_cnt  # [1, H]

    # rsqrt on the [1, H] stats, weight folded into the scale -> one FMA/elem
    inv_std = jax.lax.rsqrt(var + 1e-6)                            # [1, H]
    scale = w_ref[...] * inv_std                                   # [1, H]

    o_ref[0, :, :] = sub * scale + b_ref[...]


def graphnorm(x, batch_num_nodes, weight, bias, mean_scale):
    """GraphNorm forward: x [N, H] float32, batch_num_nodes list/array of ints.

    The batch structure (counts) is static (baked in at trace time), exactly as
    in the original code path where `graph.batch_num_nodes` drives index
    bookkeeping on the host.
    """
    x = jnp.asarray(x, jnp.float32)
    N, H = x.shape
    counts = np.asarray(batch_num_nodes, dtype=np.int32)
    B = counts.shape[0]
    assert int(counts.sum()) == N

    # --- wrapper glue (host-side index bookkeeping, mirrors repeat_interleave) ---
    # Pad each graph's contiguous node block to P rows (multiple of 8 sublanes).
    P = max(8, int(-(-int(counts.max()) // 8) * 8))
    offsets = np.concatenate([[0], np.cumsum(counts)[:-1]]).astype(np.int32)

    pad_idx = np.zeros((B, P), dtype=np.int32)           # padding rows point at row 0
    for g in range(B):
        c = int(counts[g])
        pad_idx[g, :c] = offsets[g] + np.arange(c, dtype=np.int32)
    x_padded = x[jnp.asarray(pad_idx)]                   # [B, P, H]

    w = jnp.asarray(weight, jnp.float32).reshape(1, H)
    b = jnp.asarray(bias, jnp.float32).reshape(1, H)
    ms = jnp.asarray(mean_scale, jnp.float32).reshape(1, H)
    cnt = jnp.asarray(counts, jnp.int32)                 # scalar-prefetched to SMEM

    grid_spec = pltpu.PrefetchScalarGridSpec(
        num_scalar_prefetch=1,
        grid=(B,),
        in_specs=[
            pl.BlockSpec((1, P, H), lambda g, cnt_ref: (g, 0, 0)),   # x_padded
            pl.BlockSpec((1, H), lambda g, cnt_ref: (0, 0)),         # weight
            pl.BlockSpec((1, H), lambda g, cnt_ref: (0, 0)),         # bias
            pl.BlockSpec((1, H), lambda g, cnt_ref: (0, 0)),         # mean_scale
        ],
        out_specs=pl.BlockSpec((1, P, H), lambda g, cnt_ref: (g, 0, 0)),
    )

    out_padded = pl.pallas_call(
        graphnorm_kernel,
        out_shape=jax.ShapeDtypeStruct((B, P, H), jnp.float32),
        grid_spec=grid_spec,
        compiler_params=pltpu.CompilerParams(
            dimension_semantics=("parallel",)),          # megacore-shardable on v7x
    )(cnt, x_padded, w, b, ms)

    # Drop padding rows, restore the original [N, H] layout.
    flat_valid = np.concatenate(
        [g * P + np.arange(int(counts[g]), dtype=np.int32) for g in range(B)]
    ).astype(np.int32)
    return out_padded.reshape(B * P, H)[jnp.asarray(flat_valid)]


def graphnorm_ref(x, batch_num_nodes, weight, bias, mean_scale):
    """Pure-JAX reference mirroring the PyTorch forward."""
    counts = np.asarray(batch_num_nodes, dtype=np.int64)
    B = counts.shape[0]
    gid = jnp.asarray(np.repeat(np.arange(B), counts))
    cnt = jnp.asarray(counts, jnp.float32)[:, None]
    mean = jax.ops.segment_sum(x, gid, num_segments=B) / cnt
    sub = x - mean[gid] * mean_scale[None, :]
    var = jax.ops.segment_sum(sub * sub, gid, num_segments=B) / cnt
    std = jnp.sqrt(var + 1e-6)
    return weight[None, :] * sub / std[gid] + bias[None, :]


if __name__ == "__main__":
    key = jax.random.PRNGKey(0)
    hidden_dim = 32
    batch_num_nodes = [3, 5, 4]          # 3 graphs, 12 nodes total
    N = int(np.sum(batch_num_nodes))

    x = jax.random.normal(key, (N, hidden_dim), dtype=jnp.float32)

    # Deterministic parameter init, exactly as NormLayer.__init__ (graphnorm):
    weight = jnp.ones((hidden_dim,), jnp.float32)
    bias = jnp.zeros((hidden_dim,), jnp.float32)
    mean_scale = jnp.ones((hidden_dim,), jnp.float32)

    out = graphnorm(x, batch_num_nodes, weight, bias, mean_scale)
    out = jax.block_until_ready(out)

    ref = graphnorm_ref(x, batch_num_nodes, weight, bias, mean_scale)
    np.testing.assert_allclose(np.asarray(out), np.asarray(ref), rtol=1e-5, atol=1e-5)

    print("KERNEL_OK")
</pallas_src>

<mosaic_0001>
module attributes {stable_mosaic.version = 11 : i64} {
  func.func @graphnorm_kernel(%arg0: i32, %arg1: memref<3xi32, #tpu.memory_space<smem>>, %arg2: memref<1x8x32xf32, #tpu.memory_space<vmem>>, %arg3: memref<1x32xf32, #tpu.memory_space<vmem>>, %arg4: memref<1x32xf32, #tpu.memory_space<vmem>>, %arg5: memref<1x32xf32, #tpu.memory_space<vmem>>, %arg6: memref<1x8x32xf32, #tpu.memory_space<vmem>>) attributes {dimension_semantics = [#tpu.dimension_semantics<parallel>], iteration_bounds = array<i64: 3>, scalar_prefetch = 1 : i64, scratch_operands = 0 : i64, tpu.core_type = #tpu.core_type<tc>, window_params = [{transform_indices = @transform_0, window_bounds = array<i64: 1, 8, 32>}, {pipeline_mode = #tpu.pipeline_mode<synchronous>, transform_indices = @transform_1, window_bounds = array<i64: 1, 32>}, {pipeline_mode = #tpu.pipeline_mode<synchronous>, transform_indices = @transform_2, window_bounds = array<i64: 1, 32>}, {pipeline_mode = #tpu.pipeline_mode<synchronous>, transform_indices = @transform_3, window_bounds = array<i64: 1, 32>}, {transform_indices = @transform_4, window_bounds = array<i64: 1, 8, 32>}]} {
    %0 = arith.index_cast %arg0 : i32 to index
    %1 = memref.load %arg1[%0] : memref<3xi32, #tpu.memory_space<smem>>
    %2 = arith.sitofp %1 : i32 to f32
    %cst = arith.constant 1.000000e+00 : f32
    %3 = arith.maximumf %2, %cst : f32
    %cst_0 = arith.constant 1.000000e+00 : f32
    %4 = arith.divf %cst_0, %3 : f32
    %c0 = arith.constant 0 : index
    %c0_1 = arith.constant 0 : index
    %c0_2 = arith.constant 0 : index
    %5 = vector.load %arg2[%c0, %c0_1, %c0_2] : memref<1x8x32xf32, #tpu.memory_space<vmem>>, vector<1x8x32xf32>
    %6 = vector.shape_cast %5 : vector<1x8x32xf32> to vector<8x32xf32>
    %7 = tpu.iota {dimensions = array<i32: 0>} : vector<8x1xi32>
    %8 = vector.broadcast %1 : i32 to vector<8x1xi32>
    %9 = arith.cmpi slt, %7, %8 : vector<8x1xi32>
    %10 = arith.extui %9 : vector<8x1xi1> to vector<8x1xi32>
    %11 = arith.sitofp %10 : vector<8x1xi32> to vector<8x1xf32>
    %12 = vector.broadcast %11 : vector<8x1xf32> to vector<8x32xf32>
    %13 = arith.mulf %6, %12 : vector<8x32xf32>
    %cst_3 = arith.constant dense<0.000000e+00> : vector<32xf32>
    %14 = vector.multi_reduction <add>, %13, %cst_3 [0] : vector<8x32xf32> to vector<32xf32>
    %15 = vector.shape_cast %14 : vector<32xf32> to vector<1x32xf32>
    %16 = vector.broadcast %4 : f32 to vector<1x32xf32>
    %17 = arith.mulf %15, %16 : vector<1x32xf32>
    %c0_4 = arith.constant 0 : index
    %c0_5 = arith.constant 0 : index
    %18 = vector.load %arg5[%c0_4, %c0_5] : memref<1x32xf32, #tpu.memory_space<vmem>>, vector<1x32xf32>
    %19 = arith.mulf %17, %18 : vector<1x32xf32>
    %20 = vector.broadcast %19 : vector<1x32xf32> to vector<8x32xf32>
    %21 = arith.subf %6, %20 : vector<8x32xf32>
    %22 = arith.mulf %21, %21 : vector<8x32xf32>
    %23 = vector.broadcast %11 : vector<8x1xf32> to vector<8x32xf32>
    %24 = arith.mulf %22, %23 : vector<8x32xf32>
    %cst_6 = arith.constant dense<0.000000e+00> : vector<32xf32>
    %25 = vector.multi_reduction <add>, %24, %cst_6 [0] : vector<8x32xf32> to vector<32xf32>
    %26 = vector.shape_cast %25 : vector<32xf32> to vector<1x32xf32>
    %27 = vector.broadcast %4 : f32 to vector<1x32xf32>
    %28 = arith.mulf %26, %27 : vector<1x32xf32>
    %cst_7 = arith.constant 9.99999997E-7 : f32
    %29 = vector.broadcast %cst_7 : f32 to vector<1x32xf32>
    %30 = arith.addf %28, %29 : vector<1x32xf32>
    %31 = math.rsqrt %30 : vector<1x32xf32>
    %c0_8 = arith.constant 0 : index
    %c0_9 = arith.constant 0 : index
    %32 = vector.load %arg3[%c0_8, %c0_9] : memref<1x32xf32, #tpu.memory_space<vmem>>, vector<1x32xf32>
    %33 = arith.mulf %32, %31 : vector<1x32xf32>
    %34 = vector.broadcast %33 : vector<1x32xf32> to vector<8x32xf32>
    %35 = arith.mulf %21, %34 : vector<8x32xf32>
    %c0_10 = arith.constant 0 : index
    %c0_11 = arith.constant 0 : index
    %36 = vector.load %arg4[%c0_10, %c0_11] : memref<1x32xf32, #tpu.memory_space<vmem>>, vector<1x32xf32>
    %37 = vector.broadcast %36 : vector<1x32xf32> to vector<8x32xf32>
    %38 = arith.addf %35, %37 : vector<8x32xf32>
    %c0_12 = arith.constant 0 : index
    %c0_13 = arith.constant 0 : index
    %c0_14 = arith.constant 0 : index
    %39 = vector.load %arg6[%c0_12, %c0_13, %c0_14] : memref<1x8x32xf32, #tpu.memory_space<vmem>>, vector<1x8x32xf32>
    %40 = vector.shape_cast %39 : vector<1x8x32xf32> to vector<8x32xf32>
    %41 = vector.shape_cast %38 : vector<8x32xf32> to vector<1x8x32xf32>
    tpu.vector_store %arg6[%c0_12, %c0_13, %c0_14], %41 {strides = array<i32>} : memref<1x8x32xf32, #tpu.memory_space<vmem>>, vector<1x8x32xf32>,
    return
  }
  func.func @transform_0(%arg0: i32, %arg1: memref<3xi32, #tpu.memory_space<smem>>) -> (i32, i32, i32) {
    %c0_i32 = arith.constant 0 : i32
    %c0_i32_0 = arith.constant 0 : i32
    %c0_i32_1 = arith.constant 0 : i32
    return %arg0, %c0_i32, %c0_i32_0 : i32, i32, i32
  }
  func.func @transform_1(%arg0: i32, %arg1: memref<3xi32, #tpu.memory_space<smem>>) -> (i32, i32) {
    %c0_i32 = arith.constant 0 : i32
    %c0_i32_0 = arith.constant 0 : i32
    %c0_i32_1 = arith.constant 0 : i32
    return %c0_i32, %c0_i32_0 : i32, i32
  }
  func.func @transform_2(%arg0: i32, %arg1: memref<3xi32, #tpu.memory_space<smem>>) -> (i32, i32) {
    %c0_i32 = arith.constant 0 : i32
    %c0_i32_0 = arith.constant 0 : i32
    %c0_i32_1 = arith.constant 0 : i32
    return %c0_i32, %c0_i32_0 : i32, i32
  }
  func.func @transform_3(%arg0: i32, %arg1: memref<3xi32, #tpu.memory_space<smem>>) -> (i32, i32) {
    %c0_i32 = arith.constant 0 : i32
    %c0_i32_0 = arith.constant 0 : i32
    %c0_i32_1 = arith.constant 0 : i32
    return %c0_i32, %c0_i32_0 : i32, i32
  }
  func.func @transform_4(%arg0: i32, %arg1: memref<3xi32, #tpu.memory_space<smem>>) -> (i32, i32, i32) {
    %c0_i32 = arith.constant 0 : i32
    %c0_i32_0 = arith.constant 0 : i32
    %c0_i32_1 = arith.constant 0 : i32
    return %arg0, %c0_i32, %c0_i32_0 : i32, i32, i32
  }
}

</mosaic_0001>

<bundles_post_ra>
// kernel: tpu_custom_call.1
= control target key start
LH: loop header
LB: loop body
LE: loop exit
PB: predicated region body
PF: predicated region fallthrough
CT: control target
= control target key end

     0   :  { %s765_s0 = inlined_call_operand.hbm [shape: s32[3], index: 0, kind: input, shape index: {}]   ;;  %s766_s1 = inlined_call_operand.hbm [shape: f32[3,8,32], index: 1, kind: input, shape index: {}]   ;;  %s767_s2 = inlined_call_operand.vmem [shape: f32[1,32], index: 2, kind: input, shape index: {}]   ;;  %s768_s3 = inlined_call_operand.vmem [shape: f32[1,32], index: 3, kind: input, shape index: {}]   ;;  %s769_s4 = inlined_call_operand.vmem [shape: f32[1,32], index: 4, kind: input, shape index: {}]   ;;  %s770_s5 = inlined_call_operand.hbm [shape: f32[3,8,32], index: 5, kind: output, shape index: {}]  }
   0x1   :  { %s432_s20 = scalar_lea.hbm %s765_s0, 16 }
   0x2   :  { %p433_p0 = scmp.ne.s32.totalorder %s765_s0, %s432_s20  ;;  %p436_p1 = scmp.lt.u32.totalorder %s432_s20, %s765_s0 }
   0x4   :  { %p438_p2 = pnand %p436_p1, %p433_p0 }
   0x6   :  { %441 = shalt.err (!%p438_p2)  }
   0x7   :  { %s542_s25 = smov [#allocation3]  }
   0x8   :  { %11 = dma.hbm_to_smem %s765_s0, 16, %s542_s25, [#allocation2] }
   0x9   :  { %516 = dma.done.wait [#allocation2], 16 }
   0xa   :  { %517 = vsyncadd [#allocation2], 4294967280 }
   0xb   :  { %13 = sfence }
   0xc   :  { %14 = vsyncpa [#allocation5], 0 }
   0xd   :  { %16 = vsyncpa [#allocation5 + $0x1], 0 }
   0xe   :  { %17 = vsyncpa [#allocation6], 0 }
   0xf   :  { %19 = vsyncpa [#allocation6 + $0x1], 0  ;;  %s589_s28 = smov 0   ;;  %s591_s29 = smov 0  }
  0x10   :  { %s593_s30 = smov 0   ;;  %s595_s6 = smov 0  }
  0x11 LB: > { %s610_s0 = sadd.s32 4294967295, %s540_s6   ;;  %s363_s7 = sadd.s32 4294967294, %s540_s6   ;;  %s540_s6 = sphi %s595_s6, %s784_s6   ;;  %s536_s30 = sphi %s593_s30, %s783_s30   ;;  %s532_s29 = sphi %s591_s29, %s782_s29   ;;  %s528_s28 = sphi %s589_s28, %s781_s28  }
  0x12   : > { %s614_s8 = sadd.s32 1, %s540_s6   ;;  %s32_s9 = sadd.s32 1, %s536_s30 }
  0x13   : > { %s29_s10 = ssub.s32 %s540_s6, %s614_s8  ;;  %p39_p3 = scmp.ne.s32.totalorder %s536_s30, %s532_s29 }
  0x14   : > { %p30_p4 = scmp.eq.s32.totalorder %s29_s10, 0  ;;  %p40_p5 = scmp.eq.s32.totalorder %s540_s6, 0 }
  0x15   : > { %p45_p6 = scmp.ne.s32.totalorder %s532_s29, %s528_s28  ;;  %p46_p7 = scmp.eq.s32.totalorder %s610_s0, 0 }
  0x16   : > { %s626_s11 = scalar_select %p30_p4, %s536_s30, %s32_s9  }
  0x17   : > { %p628_p8 = por %p40_p5, %p39_p3  ;;  %p632_p9 = por %p46_p7, %p45_p6 }
  0x18   : > { %p132_p10 = scmp.eq.s32.totalorder %s610_s0, 2  ;;  %p138_p11 = scmp.eq.s32.totalorder %s363_s7, 2 }
  0x19   : > { %p391_p12 = scmp.lt.s32.totalorder %s540_s6, 3  ;;  %s167_s16 = sand.u32 1, %s536_s30  }
  0x1a   : > { %p638_p13 = por %p132_p10, %p39_p3  ;;  %p642_p0 = por %p138_p11, %p45_p6 }
  0x1b   : > { %s367_s17 = sshll.u32 %s540_s6, 7  ;;  %s366_s18 = sshll.u32 %s167_s16, 3 }
  0x1c   : > { %s774_s14 = scalar_select %p638_p13, 1, 0 }
  0x1d   : > { %s775_s15 = scalar_select %p642_p0, 1, 0 }
  0x1e   : > { %s651_s21 = scalar_lea.hbm %s766_s1, %s367_s17  ;;  %s171_s22 = scalar_lea.vmem [#allocation4], %s366_s18 }
  0x1f   : > { %s178_s23 = sshll.u32 %s171_s22, 4  ;;  %p655_p1 = pnand %p391_p12, %p628_p8  ;;  %s659_s23 = int_to_ptr.vmem [resolvable:$true] %s178_s23 }
  0x20   : > { %s168_s25 = scalar_lea.sflag [#allocation5], %s167_s16  ;;  %s442_s26 = scalar_lea.hbm %s651_s21, 128 }
  0x21   : > { %p443_p4 = scmp.ne.s32.totalorder %s651_s21, %s442_s26  ;;  %p444_p5 = pneg %p655_p1 }
  0x22   : > { %s447_s9 = scalar_lea.hbm %s766_s1, 384  ;;  %p448_p8 = scmp.lt.u32.totalorder %s651_s21, %s766_s1 }
  0x23   : > { %p445_p6 = pnand %p444_p5, %p443_p4  ;;  %p449_p10 = scmp.lt.u32.totalorder %s447_s9, %s442_s26 }
  0x24   : > { %p451_p12 = scmp.lt.u32.totalorder %s442_s26, %s651_s21 }
  0x25   : > { %p446_p7 = pneg %p445_p6  ;;  %p450_p11 = por %p449_p10, %p448_p8 }
  0x27   : > { %p452_p2 = por %p451_p12, %p450_p11 }
  0x29   : > { %p453_p3 = pnand %p452_p2, %p446_p7 }
  0x2b   : > { %456 = shalt.err (!%p453_p3)
}
  0x2c   : > { %s457_s16 = scalar_lea.vmem %s659_s23, 128  ;;  %s543_s17 = smov [#allocation4]  }
  0x2d   : > { %p458_p4 = scmp.ne.s32.totalorder %s659_s23, %s457_s16  ;;  %s462_s18 = sshll.u32 %s543_s17, 4  ;;  %s463_s18 = int_to_ptr.vmem [resolvable:$false] %s462_s18 }
  0x2e   : > { %s464_s19 = scalar_lea.vmem %s463_s18, 256  ;;  %p465_p13 = scmp.lt.s32.totalorder %s659_s23, %s463_s18 }
  0x2f   : > { %p460_p6 = pnand %p458_p4, %p444_p5  ;;  %p466_p8 = scmp.lt.s32.totalorder %s464_s19, %s457_s16 }
  0x31   : > { %p461_p0 = pneg %p460_p6  ;;  %p467_p10 = por %p466_p8, %p465_p13 }
  0x33   : > { %p468_p11 = pnand %p467_p10, %p461_p0 }
  0x35   : > { %471 = shalt.err (!%p468_p11)
}
  0x36   : > { %386 = dma.hbm_to_vmem [thread:$0]  (!%p655_p1), %s651_s21, 128, %s659_s23, %s168_s25  }
  0x37   : > { %p777_p2 = scmp.lt.s32.totalorder %s540_s6, 4  ;;  %p778_p3 = scmp.ge.s32.totalorder %s540_s6, 1 }
  0x39   : > { %p184_p5 = pnand %p778_p3, %p777_p2 }
  0x3a   : > { %s693_s20 = sand.u32 (!%p184_p5), 1, %s532_s29  }
  0x3b   : > { %187 = sbr.rel (%p184_p5) target bundleno = 201 (0xc9), region = 36  ;;  %s369_s22 = sshll.u32 (!%p184_p5), %s693_s20, 3 }
  0x3c   : > { %s190_s26 = scalar_lea.sflag (!%p184_p5), [#allocation5], %s693_s20  ;;  %s193_s24 = scalar_lea.vmem (!%p184_p5), [#allocation4], %s369_s22 }
  0x42   : > { %519 = dma.done.wait (%p632_p9), %s190_s26, 128  }
  0x43   : > { %521 = vsyncadd (%p632_p9), %s190_s26, 4294967168  ;;  %s218_s21 = sld [smem:[#allocation3 + %s610_s0]]  ;;  %s544_s25 = smov 1.0   ;;  %v225_v2 = vlaneseq  ;;  %v224_v5 = vld [vmem:[%s193_s24] sm:$0xff]  ;;  %v545_v6 = vmov 0.0   ;;  %vm232_vm1 = vcmask 261120  }
  0x44   : > { %v242_v17 = vld [vmem:[%s769_s4] sm:$0x1]  ;;  %s374_s18 = sshll.u32 %s610_s0, 7  ;;  %s217_s19 = scalar_lea.vmem [#allocation7], %s369_s22 }
  0x45   : > { %v226_v3 = vshrl.u32 %v225_v2, 7  ;;  %v261_v34 = vld [vmem:[%s767_s2] sm:$0x1]  ;;  %s293_s26 = sshll.u32 %s217_s19, 4  ;;  %p779_p13 = scmp.ne.s32.totalorder %s774_s14, 0  ;;  %s723_s26 = int_to_ptr.vmem [resolvable:$true] %s293_s26 }
  0x46   : > { %v372_v38 = vld [vmem:[%s768_s3] ss:$0 sm:$0xff]  ;;  %s546_s0 = smov [#allocation7]  }
  0x47   : > { %v246_v19 = vsub.s32 0, %v226_v3  ;;  %s476_s22 = sshll.u32 %s546_s0, 4  ;;  %s477_s22 = int_to_ptr.vmem [resolvable:$false] %s476_s22 }
  0x48   : > { %p479_p7 = scmp.lt.s32.totalorder %s723_s26, %s477_s22 }
  0x49   : > { %s219_s23 = scvt.s32.f32 %s218_s21  ;;  %v227_v4 = vstv %s218_s21 }
  0x4a   : > { %vm228_vm0 = vcmp.lt.s32.totalorder %v226_v3, %v227_v4 }
  0x4b   : > { %s220_s27 = smax.f32 %s544_s25, %s219_s23  ;;  %v371_v7 = vsel %vm228_vm0, 1.0, %v545_v6  ;;  %s721_s23 = scalar_lea.hbm %s770_s5, %s374_s18 }
  0x4c   : > { %v221_v0 = vstv %s220_s27  ;;  %v231_v8 = vmul.f32 %v371_v7, %v224_v5  ;;  %s280_s25 = scalar_lea.sflag [#allocation6], %s693_s20  ;;  %s472_s27 = scalar_lea.vmem %s723_s26, 128 }
  0x4d   : > { %428 = vrcp.f32 %v221_v0  ;;  %p473_p9 = scmp.ne.s32.totalorder %s723_s26, %s472_s27 }
  0x4e   : > { %v233_v9 = vsel %vm232_vm1, %v231_v8, 0.0 }
  0x4f   : > { %v234_v10 = vrot.slane %v233_v9, 4  ;;  %p474_p0 = pnand %p473_p9, %p779_p13 }
  0x51   : > { %v235_v11 = vadd.f32 %v234_v10, %v233_v9  ;;  %p475_p1 = pneg %p474_p0 }
  0x53   : > { %v236_v12 = vrot.slane %v235_v11, 2 }
  0x55   : > { %v237_v13 = vadd.f32 %v236_v12, %v235_v11 }
  0x57   : > { %v429_v1 = vpop.eup %428  ;;  %v238_v14 = vrot.slane %v237_v13, 1 }
  0x58   : > { %377 = vpush %v429_v1 }
  0x59   : > { %v239_v15 = vadd.f32 %v238_v14, %v237_v13 }
  0x89   : > { %s378_s13 = spop %377 }
  0x8a   : > { %v240_v16 = vstv %s378_s13  ;;  %s478_s13 = scalar_lea.vmem %s477_s22, 256 }
  0x8b   : > { %v241_v18 = vmul.f32 %v240_v16, %v239_v15  ;;  %p480_p12 = scmp.lt.s32.totalorder %s478_s13, %s472_s27 }
  0x8d   : > { %v243_v20 = vmul.f32 %v242_v17, %v241_v18  ;;  %p481_p4 = por %p480_p12, %p479_p7 }
  0x8f   : > { %v247_v21 = vrot.slane %v243_v20, %v246_v19  ;;  %p482_p6 = pnand %p481_p4, %p475_p1 }
  0x91   : > { %v248_v22 = vsub.f32 %v224_v5, %v247_v21 }
  0x93   : > { %v249_v23 = vmul.f32 %v248_v22, %v248_v22 }
  0x95   : > { %v250_v24 = vmul.f32 %v371_v7, %v249_v23 }
  0x97   : > { %v251_v25 = vsel %vm232_vm1, %v250_v24, 0.0 }
  0x98   : > { %v252_v26 = vrot.slane %v251_v25, 4 }
  0x9a   : > { %v253_v27 = vadd.f32 %v252_v26, %v251_v25 }
  0x9c   : > { %v254_v28 = vrot.slane %v253_v27, 2 }
  0x9e   : > { %v255_v29 = vadd.f32 %v254_v28, %v253_v27 }
  0xa0   : > { %v256_v30 = vrot.slane %v255_v29, 1 }
  0xa2   : > { %v257_v31 = vadd.f32 %v256_v30, %v255_v29 }
  0xa4   : > { %v258_v32 = vmul.f32 %v257_v31, %v240_v16 }
  0xa6   : > { %v259_v33 = vadd.f32 1e-06, %v258_v32 }
  0xa8   : > { %430 = vrsqrt.f32 %v259_v33 }
  0xb2   : > { %v431_v35 = vpop.eup %430 }
  0xb3   : > { %v262_v36 = vmul.f32 %v431_v35, %v261_v34 }
  0xb5   : > { %v267_v37 = vrot.slane %v262_v36, %v246_v19 }
  0xb7   : > { %v269_v39 = vmul.f32 %v267_v37, %v248_v22 }
  0xb9   : > { %v277_v40 = vadd.f32 %v372_v38, %v269_v39 }
  0xbb   : > { %278 = vst.msk [vmem:[%s217_s19] sm:$0xff] %vm232_vm1, %v277_v40 }
  0xbc   : > { %485 = shalt.err (!%p482_p6)
}
  0xbd   : > { %s486_s20 = scalar_lea.hbm %s721_s23, 128  ;;  %s490_s10 = scalar_lea.hbm %s770_s5, 384 }
  0xbe   : > { %p487_p8 = scmp.ne.s32.totalorder %s721_s23, %s486_s20  ;;  %p491_p2 = scmp.lt.u32.totalorder %s721_s23, %s770_s5 }
  0xbf   : > { %p492_p3 = scmp.lt.u32.totalorder %s490_s10, %s486_s20  ;;  %p494_p9 = scmp.lt.u32.totalorder %s486_s20, %s721_s23 }
  0xc0   : > { %p488_p10 = pnand %p487_p8, %p779_p13 }
  0xc1   : > { %p493_p5 = por %p492_p3, %p491_p2 }
  0xc2   : > { %p489_p11 = pneg %p488_p10 }
  0xc3   : > { %p495_p0 = por %p494_p9, %p493_p5 }
  0xc5   : > { %p496_p1 = pnand %p495_p0, %p489_p11 }
  0xc7   : > { %499 = shalt.err (!%p496_p1)
}
  0xc8   : > { %381 = dma.vmem_to_hbm [thread:$0]  (%p779_p13), %s723_s26, 128, %s721_s23, %s280_s25  }
  0xc9 PF: > { %p392_p7 = scmp.ge.s32.totalorder %s540_s6, 2  ;;  %s305_s17 = sand.u32 1, %s528_s28  }
  0xca   : > { %p780_p12 = scmp.ne.s32.totalorder %s775_s15, 0  ;;  %s306_s18 = scalar_lea.sflag [#allocation6], %s305_s17 }
  0xcc   : > { %p388_p4 = pnand %p392_p7, %p780_p12 }
  0xce   : > { %523 = dma.done.wait (!%p388_p4), %s306_s18, 128  }
  0xcf   : > { %525 = vsyncadd (!%p388_p4), %s306_s18, 4294967168  ;;  %p22_p6 = scmp.ge.s32.totalorder %s614_s8, 5   ;;  %s781_s28 = smov %s532_s29 }
  0xd0   : > { %s782_s29 = smov %s536_s30  ;;  %s783_s30 = smov %s626_s11 }
  0xd1   : > { %s784_s6 = smov %s614_s8  ;;  %24 = sbr.rel (!%p22_p6) target bundleno = 17 (0x11), region = 81 }
  0xd8   :  { %311 = vsyncpa [#allocation5], 1 }
  0xd9   :  { %313 = vsyncpa [#allocation5 + $0x1], 1 }
  0xda   :  { %314 = vsyncpa [#allocation6], 1 }
  0xdb   :  { %316 = vsyncpa [#allocation6 + $0x1], 1 }

</bundles_post_ra>
